<compile_context>
chip_gen: v7x
topology: tpu7x:2x2x1
jax: 0.10.0
libtpu: 0.0.40
codegen_flags: <defaults>
</compile_context>

<pallas_src>
import jax
import jax.numpy as jnp
from jax.experimental import pallas as pl
from jax.experimental.pallas import tpu as pltpu

_TARGET_BLOCK_BYTES = 1 << 20  # ~1 MiB blocks: >=512 KiB hits ~85% of HBM roofline


def _blur_kernel(x_ref, o_ref):
    # x_ref / o_ref: (n_tile, H, W) in the caller's dtype; math in f32.
    x = x_ref[...].astype(jnp.float32)
    H = x.shape[1]
    W = x.shape[2]

    # Vertical [1,2,1]*0.25 pass, reflect boundary: row(-1) := row(1), row(H) := row(H-2).
    up = jnp.concatenate([x[:, 1:2, :], x[:, : H - 1, :]], axis=1)            # up[i]   = x[i-1]
    down = jnp.concatenate([x[:, 1:, :], x[:, H - 2 : H - 1, :]], axis=1)     # down[i] = x[i+1]
    v = (up + 2.0 * x + down) * jnp.float32(0.25)

    # Horizontal [1,2,1]*0.25 pass, reflect boundary: col(-1) := col(1), col(W) := col(W-2).
    left = jnp.concatenate([v[:, :, 1:2], v[:, :, : W - 1]], axis=2)          # left[j]  = v[j-1]
    right = jnp.concatenate([v[:, :, 1:], v[:, :, W - 2 : W - 1]], axis=2)    # right[j] = v[j+1]

    # Overall scale 0.25 * 0.25 == 1/16 (power-of-two scaling, exact).
    o_ref[...] = ((left + 2.0 * v + right) * jnp.float32(0.25)).astype(o_ref.dtype)


@jax.jit
def gaussian_blur(x):
    """JAX/Pallas equivalent of GaussianBlurModule(C, ...).forward(x), x: (B, C, H, W)."""
    B, C, H, W = x.shape
    if H < 2 or W < 2:
        # Matches PyTorch: reflect padding of 1 requires the padded dims to be >= 2.
        raise ValueError("gaussian_blur requires H >= 2 and W >= 2")
    N = B * C
    xr = x.reshape(N, H, W)  # I/O in the input dtype; f32 math happens in-kernel.

    # Tile the embarrassingly-parallel N axis.  Block ~1 MiB in the I/O dtype:
    # double-buffered in+out + a handful of f32 temporaries stays well under the
    # 32 MiB scoped-VMEM limit requested below (and v7x's 64 MiB physical VMEM).
    per_image_bytes = H * W * xr.dtype.itemsize
    n_tile = max(1, min(N, _TARGET_BLOCK_BYTES // max(per_image_bytes, 1)))
    grid = (pl.cdiv(N, n_tile),)  # ragged last block is safe: no coupling along N

    out = pl.pallas_call(
        _blur_kernel,
        out_shape=jax.ShapeDtypeStruct((N, H, W), xr.dtype),
        grid=grid,
        in_specs=[pl.BlockSpec((n_tile, H, W), lambda i: (i, 0, 0))],
        out_specs=pl.BlockSpec((n_tile, H, W), lambda i: (i, 0, 0)),
        compiler_params=pltpu.CompilerParams(
            # N axis is independent per image -> shard across TCs on v7x.
            dimension_semantics=("parallel",),
            vmem_limit_bytes=32 * 1024 * 1024,
        ),
    )(xr)

    return out.reshape(B, C, H, W)


def _reference_blur(x):
    """Pure-JAX reference mirroring the PyTorch module (reflect pad + grouped conv2d)."""
    B, C, H, W = x.shape
    k = (1.0 / 16.0) * jnp.array(
        [[1.0, 2.0, 1.0], [2.0, 4.0, 2.0], [1.0, 2.0, 1.0]], jnp.float32
    )
    kern = jnp.tile(k[None, None, :, :], (C, 1, 1, 1))  # (C, 1, 3, 3), groups=C
    xpad = jnp.pad(x.astype(jnp.float32), ((0, 0), (0, 0), (1, 1), (1, 1)), mode="reflect")
    return jax.lax.conv_general_dilated(
        xpad,
        kern,
        window_strides=(1, 1),
        padding="VALID",
        dimension_numbers=("NCHW", "OIHW", "NCHW"),
        feature_group_count=C,
        precision=jax.lax.Precision.HIGHEST,
    )


if __name__ == "__main__":
    key = jax.random.PRNGKey(0)
    B, C, H, W = 2, 4, 16, 16
    x = jax.random.uniform(key, (B, C, H, W), jnp.float32)

    ref = _reference_blur(x)

    # f32 path: exact-tolerance check against the conv reference.
    y = jax.block_until_ready(gaussian_blur(x))
    assert y.shape == (B, C, H, W) and y.dtype == x.dtype
    max_err = float(jnp.max(jnp.abs(y - ref)))
    assert jnp.allclose(y, ref, rtol=1e-5, atol=1e-5), f"max abs err {max_err}"

    # bf16 path: dtype-preserving I/O with f32 math in-kernel (loose tolerance).
    xb = x.astype(jnp.bfloat16)
    yb = jax.block_until_ready(gaussian_blur(xb))
    assert yb.dtype == jnp.bfloat16 and yb.shape == (B, C, H, W)
    assert jnp.allclose(yb.astype(jnp.float32), ref, atol=3e-2)

    print("KERNEL_OK")
</pallas_src>

<mosaic_0001>
module attributes {stable_mosaic.version = 11 : i64} {
  func.func @_blur_kernel(%arg0: i32, %arg1: memref<8x16x16xf32, #tpu.memory_space<vmem>>, %arg2: memref<8x16x16xf32, #tpu.memory_space<vmem>>) attributes {dimension_semantics = [#tpu.dimension_semantics<parallel>], iteration_bounds = array<i64: 1>, scalar_prefetch = 0 : i64, scratch_operands = 0 : i64, tpu.core_type = #tpu.core_type<tc>, window_params = [{transform_indices = @transform_0, window_bounds = array<i64: 8, 16, 16>}, {transform_indices = @transform_1, window_bounds = array<i64: 8, 16, 16>}]} {
    %c0 = arith.constant 0 : index
    %c0_0 = arith.constant 0 : index
    %c0_1 = arith.constant 0 : index
    %0 = vector.load %arg1[%c0, %c0_0, %c0_1] : memref<8x16x16xf32, #tpu.memory_space<vmem>>, vector<8x16x16xf32>
    %1 = vector.extract_strided_slice %0 {offsets = [0, 1, 0], sizes = [8, 1, 16], strides = [1, 1, 1]} : vector<8x16x16xf32> to vector<8x1x16xf32>
    %2 = vector.extract_strided_slice %0 {offsets = [0, 0, 0], sizes = [8, 15, 16], strides = [1, 1, 1]} : vector<8x16x16xf32> to vector<8x15x16xf32>
    %3 = tpu.concatenate %1, %2 in 1 : vector<8x1x16xf32>, vector<8x15x16xf32> -> vector<8x16x16xf32>
    %4 = vector.extract_strided_slice %0 {offsets = [0, 1, 0], sizes = [8, 15, 16], strides = [1, 1, 1]} : vector<8x16x16xf32> to vector<8x15x16xf32>
    %5 = vector.extract_strided_slice %0 {offsets = [0, 14, 0], sizes = [8, 1, 16], strides = [1, 1, 1]} : vector<8x16x16xf32> to vector<8x1x16xf32>
    %6 = tpu.concatenate %4, %5 in 1 : vector<8x15x16xf32>, vector<8x1x16xf32> -> vector<8x16x16xf32>
    %cst = arith.constant 2.000000e+00 : f32
    %7 = vector.broadcast %cst : f32 to vector<8x16x16xf32>
    %8 = arith.mulf %7, %0 : vector<8x16x16xf32>
    %9 = arith.addf %3, %8 : vector<8x16x16xf32>
    %10 = arith.addf %9, %6 : vector<8x16x16xf32>
    %cst_2 = arith.constant 2.500000e-01 : f32
    %11 = vector.broadcast %cst_2 : f32 to vector<8x16x16xf32>
    %12 = arith.mulf %10, %11 : vector<8x16x16xf32>
    %13 = vector.extract_strided_slice %12 {offsets = [0, 0, 1], sizes = [8, 16, 1], strides = [1, 1, 1]} : vector<8x16x16xf32> to vector<8x16x1xf32>
    %14 = vector.extract_strided_slice %12 {offsets = [0, 0, 0], sizes = [8, 16, 15], strides = [1, 1, 1]} : vector<8x16x16xf32> to vector<8x16x15xf32>
    %15 = tpu.concatenate %13, %14 in 2 : vector<8x16x1xf32>, vector<8x16x15xf32> -> vector<8x16x16xf32>
    %16 = vector.extract_strided_slice %12 {offsets = [0, 0, 1], sizes = [8, 16, 15], strides = [1, 1, 1]} : vector<8x16x16xf32> to vector<8x16x15xf32>
    %17 = vector.extract_strided_slice %12 {offsets = [0, 0, 14], sizes = [8, 16, 1], strides = [1, 1, 1]} : vector<8x16x16xf32> to vector<8x16x1xf32>
    %18 = tpu.concatenate %16, %17 in 2 : vector<8x16x15xf32>, vector<8x16x1xf32> -> vector<8x16x16xf32>
    %cst_3 = arith.constant 2.000000e+00 : f32
    %19 = vector.broadcast %cst_3 : f32 to vector<8x16x16xf32>
    %20 = arith.mulf %19, %12 : vector<8x16x16xf32>
    %21 = arith.addf %15, %20 : vector<8x16x16xf32>
    %22 = arith.addf %21, %18 : vector<8x16x16xf32>
    %cst_4 = arith.constant 2.500000e-01 : f32
    %23 = vector.broadcast %cst_4 : f32 to vector<8x16x16xf32>
    %24 = arith.mulf %22, %23 : vector<8x16x16xf32>
    %c0_5 = arith.constant 0 : index
    %c0_6 = arith.constant 0 : index
    %c0_7 = arith.constant 0 : index
    %25 = vector.load %arg2[%c0_5, %c0_6, %c0_7] : memref<8x16x16xf32, #tpu.memory_space<vmem>>, vector<8x16x16xf32>
    tpu.vector_store %arg2[%c0_5, %c0_6, %c0_7], %24 {strides = array<i32>} : memref<8x16x16xf32, #tpu.memory_space<vmem>>, vector<8x16x16xf32>,
    return
  }
  func.func @transform_0(%arg0: i32) -> (i32, i32, i32) {
    %c0_i32 = arith.constant 0 : i32
    %c0_i32_0 = arith.constant 0 : i32
    %c0_i32_1 = arith.constant 0 : i32
    return %arg0, %c0_i32, %c0_i32_0 : i32, i32, i32
  }
  func.func @transform_1(%arg0: i32) -> (i32, i32, i32) {
    %c0_i32 = arith.constant 0 : i32
    %c0_i32_0 = arith.constant 0 : i32
    %c0_i32_1 = arith.constant 0 : i32
    return %arg0, %c0_i32, %c0_i32_0 : i32, i32, i32
  }
}

</mosaic_0001>

<bundles_post_ra>
// kernel: gaussian_blur.1
= control target key start
LH: loop header
LB: loop body
LE: loop exit
PB: predicated region body
PF: predicated region fallthrough
CT: control target
= control target key end

     0   :  { %6 = vsyncpa [#allocation3], 0  ;;  %s793_s0 = inlined_call_operand.hbm [shape: f32[8,16,16], index: 0, kind: input, shape index: {}]   ;;  %s794_s1 = inlined_call_operand.hbm [shape: f32[8,16,16], index: 1, kind: output, shape index: {}]  }
   0x1   :  { %7 = vsyncpa [#allocation4], 0  ;;  %s531_s6 = smov [#allocation2]   ;;  %s483_s10 = scalar_lea.hbm %s793_s0, 2048 }
   0x2   :  { %s13_s7 = sshll.u32 %s531_s6, 4  ;;  %p484_p0 = scmp.ne.s32.totalorder %s793_s0, %s483_s10  ;;  %s14_s7 = int_to_ptr.vmem [resolvable:$true] %s13_s7 }
   0x3   :  { %p487_p1 = scmp.lt.u32.totalorder %s483_s10, %s793_s0 }
   0x5   :  { %p489_p2 = pnand %p487_p1, %p484_p0 }
   0x7   :  { %492 = shalt.err (!%p489_p2)
}
   0x8   :  { %s493_s15 = scalar_lea.vmem %s14_s7, 2048  ;;  %p498_p4 = scmp.lt.s32.totalorder %s14_s7, %s14_s7 }
   0x9   :  { %p494_p3 = scmp.ne.s32.totalorder %s14_s7, %s493_s15  ;;  %p499_p5 = scmp.lt.s32.totalorder %s493_s15, %s493_s15 }
   0xb   :  { %p500_p6 = por %p499_p5, %p498_p4 }
   0xd   :  { %p501_p7 = pnand %p500_p6, %p494_p3 }
   0xf   :  { %504 = shalt.err (!%p501_p7)
}
  0x10   :  { %s532_s16 = smov 128   ;;  %s533_s17 = smov 8  }
  0x11   :  { %19 = dma.hbm_to_vmem [thread:$0]  %s793_s0, 2048, %s14_s7, [#allocation3], %s532_s16, %s532_s16, %s533_s17  }
  0x12   :  { %527 = dma.done.wait [#allocation3], 2048  }
  0x13   :  { %528 = vsyncadd [#allocation3], 4294965248  ;;  %v25_v0 = vld [vmem:[#allocation2 + $0x10] sm:$0xff]  ;;  %v26_v1 = vld [vmem:[#allocation2 + $0x18] sm:$0xff]  ;;  %vm71_vm0 = vcmask 1040384   ;;  %vm120_vm1 = vcmask 1046528  }
  0x14   :  { %v23_v2 = vld [vmem:[#allocation2] sm:$0xff]  ;;  %v48_v3 = vrot.slane %v25_v0, 1  ;;  %v75_v4 = vrot.slane %v25_v0, 7  ;;  %v123_v5 = vrot.slane %v26_v1, 1  ;;  %v171_v6 = vmul.f32 2.0, %v25_v0  ;;  %v24_v7 = vld [vmem:[#allocation2 + $0x8] sm:$0xff] }
  0x15   :  { %v47_v8 = vrot.slane %v23_v2, 1  ;;  %v72_v9 = vrot.slane %v23_v2, 7  ;;  %v121_v10 = vrot.slane %v24_v7, 1  ;;  %v169_v11 = vmul.f32 2.0, %v23_v2  ;;  %v27_v20 = vld [vmem:[#allocation2 + $0x20] sm:$0xff]  ;;  %v28_v21 = vld [vmem:[#allocation2 + $0x28] sm:$0xff] }
  0x16   :  { %v113_v12 = vsel %vm71_vm0, %v48_v3, %v75_v4  ;;  %v124_v13 = vsel %vm120_vm1, %v48_v3, %v123_v5  ;;  %v76_v14 = vrot.slane %v26_v1, 7  ;;  %v172_v15 = vmul.f32 2.0, %v26_v1  ;;  %v29_v38 = vld [vmem:[#allocation2 + $0x30] sm:$0xff]  ;;  %v30_v43 = vld [vmem:[#allocation2 + $0x38] sm:$0xff]  ;;  %s534_s0 = smov 127   ;;  %v31_v48 = vld [vmem:[#allocation2 + $0x40] sm:$0xff] }
  0x17   :  { %v187_v16 = vadd.f32 %v171_v6, %v113_v12  ;;  %v112_v17 = vsel %vm71_vm0, %v47_v8, %v72_v9  ;;  %v122_v18 = vsel %vm120_vm1, %v47_v8, %v121_v10  ;;  %v73_v19 = vrot.slane %v24_v7, 7  ;;  %v32_v57 = vld [vmem:[#allocation2 + $0x48] sm:$0xff]  ;;  %v33_v6 = vld [vmem:[#allocation2 + $0x50] sm:$0xff]  ;;  %s535_s20 = smov 1   ;;  %s536_s21 = smov [#allocation5]  }
  0x18   :  { %v185_v22 = vadd.f32 %v169_v11, %v112_v17  ;;  %v77_v23 = vsel %vm71_vm0, %v75_v4, %v76_v14  ;;  %v162_v24 = vsel %vm120_vm1, %v123_v5, %v76_v14  ;;  %v170_v25 = vmul.f32 2.0, %v24_v7  ;;  %v34_v11 = vld [vmem:[#allocation2 + $0x58] sm:$0xff]  ;;  %s465_s22 = sshll.u32 %s536_s21, 4  ;;  %s466_s22 = int_to_ptr.vmem [resolvable:$true] %s465_s22 }
  0x19   :  { %v203_v26 = vadd.f32 %v187_v16, %v124_v13  ;;  %v188_v27 = vadd.f32 %v172_v15, %v77_v23  ;;  %v74_v28 = vsel %vm71_vm0, %v72_v9, %v73_v19  ;;  %v161_v29 = vsel %vm120_vm1, %v121_v10, %v73_v19  ;;  %s505_s23 = scalar_lea.vmem %s466_s22, 2048  ;;  %p510_p9 = scmp.lt.s32.totalorder %s466_s22, %s466_s22 }
  0x1a   :  { %v201_v30 = vadd.f32 %v185_v22, %v122_v18  ;;  %v186_v31 = vadd.f32 %v170_v25, %v74_v28  ;;  %v78_v32 = vrot.slane %v27_v20, 7  ;;  %v79_v33 = vrot.slane %v28_v21, 7  ;;  %p506_p8 = scmp.ne.s32.totalorder %s466_s22, %s505_s23  ;;  %p511_p10 = scmp.lt.s32.totalorder %s505_s23, %s505_s23 }
  0x1b   :  { %v570_v34 = vmul.f32 0.25, %v203_v26  ;;  %v204_v35 = vadd.f32 %v188_v27, %v162_v24  ;;  %v125_v36 = vrot.slane %v28_v21, 1  ;;  %v174_v37 = vmul.f32 2.0, %v28_v21  ;;  %v35_v24 = vld [vmem:[#allocation2 + $0x60] sm:$0xff] }
  0x1c   :  { %v572_v39 = vmul.f32 0.25, %v201_v30  ;;  %v202_v40 = vadd.f32 %v186_v31, %v161_v29  ;;  %v80_v41 = vsel %vm71_vm0, %v78_v32, %v79_v33  ;;  %v49_v42 = vrot.slane %v27_v20, 1  ;;  %v36_v29 = vld [vmem:[#allocation2 + $0x68] sm:$0xff]  ;;  %p512_p11 = por %p511_p10, %p510_p9 }
  0x1d   :  { %253 = vrot.lane.b32.xlu1 %v570_v34, %s534_s0  ;;  %v577_v44 = vmul.f32 0.25, %v204_v35  ;;  %v163_v45 = vsel %vm120_vm1, %v125_v36, %v79_v33  ;;  %v190_v46 = vadd.f32 %v174_v37, %v80_v41  ;;  %v173_v47 = vmul.f32 2.0, %v27_v20 }
  0x1e   :  { %249 = vrot.lane.b32.xlu0 %v572_v39, %s534_s0  ;;  %v582_v49 = vmul.f32 0.25, %v202_v40  ;;  %v114_v50 = vsel %vm71_vm0, %v49_v42, %v78_v32  ;;  %v126_v51 = vsel %vm120_vm1, %v49_v42, %v125_v36  ;;  %v81_v52 = vrot.slane %v29_v38, 7  ;;  %p513_p12 = pnand %p512_p11, %p506_p8 }
  0x1f   :  { %v206_v53 = vadd.f32 %v190_v46, %v163_v45  ;;  %v189_v54 = vadd.f32 %v173_v47, %v114_v50  ;;  %v82_v55 = vrot.slane %v30_v43, 7  ;;  %v127_v56 = vrot.slane %v30_v43, 1  ;;  %v37_v45 = vld [vmem:[#allocation2 + $0x70] sm:$0xff] }
  0x20   :  { %v176_v58 = vmul.f32 2.0, %v30_v43  ;;  %v50_v59 = vrot.slane %v29_v38, 1  ;;  %v175_v60 = vmul.f32 2.0, %v29_v38  ;;  %v84_v61 = vrot.slane %v31_v48, 7 }
  0x21   :  { %255 = vrot.lane.b32.xlu1 %v577_v44, %s534_s0  ;;  %v588_v62 = vmul.f32 0.25, %v206_v53  ;;  %v205_v63 = vadd.f32 %v189_v54, %v126_v51  ;;  %v83_v0 = vsel %vm71_vm0, %v81_v52, %v82_v55  ;;  %v164_v1 = vsel %vm120_vm1, %v127_v56, %v82_v55  ;;  %v38_v51 = vld [vmem:[#allocation2 + $0x78] sm:$0xff] }
  0x22   :  { %251 = vrot.lane.b32.xlu0 %v582_v49, %s534_s0  ;;  %v192_v2 = vadd.f32 %v176_v58, %v83_v0  ;;  %v115_v3 = vsel %vm71_vm0, %v50_v59, %v81_v52  ;;  %v128_v4 = vsel %vm120_vm1, %v50_v59, %v127_v56  ;;  %v85_v5 = vrot.slane %v32_v57, 7 }
  0x23   :  { %v596_v7 = vmul.f32 0.25, %v205_v63  ;;  %v191_v8 = vadd.f32 %v175_v60, %v115_v3  ;;  %v129_v9 = vrot.slane %v32_v57, 1  ;;  %v178_v10 = vmul.f32 2.0, %v32_v57 }
  0x24   :  { %v208_v12 = vadd.f32 %v192_v2, %v164_v1  ;;  %v86_v13 = vsel %vm71_vm0, %v84_v61, %v85_v5  ;;  %v51_v14 = vrot.slane %v31_v48, 1  ;;  %v177_v15 = vmul.f32 2.0, %v31_v48 }
  0x25   :  { %259 = vrot.lane.b32.xlu1 %v588_v62, %s534_s0  ;;  %v207_v16 = vadd.f32 %v191_v8, %v128_v4  ;;  %v165_v17 = vsel %vm120_vm1, %v129_v9, %v85_v5  ;;  %v194_v18 = vadd.f32 %v178_v10, %v86_v13  ;;  %v87_v19 = vrot.slane %v33_v6, 7 }
  0x26   :  { %257 = vrot.lane.b32.xlu0 %v596_v7, %s534_s0  ;;  %v604_v20 = vmul.f32 0.25, %v208_v12  ;;  %v116_v21 = vsel %vm71_vm0, %v51_v14, %v84_v61  ;;  %v130_v22 = vsel %vm120_vm1, %v51_v14, %v129_v9  ;;  %v88_v23 = vrot.slane %v34_v11, 7 }
  0x27   :  { %v608_v25 = vmul.f32 0.25, %v207_v16  ;;  %v210_v26 = vadd.f32 %v194_v18, %v165_v17  ;;  %v193_v27 = vadd.f32 %v177_v15, %v116_v21  ;;  %v131_v28 = vrot.slane %v34_v11, 1 }
  0x28   :  { %v89_v30 = vsel %vm71_vm0, %v87_v19, %v88_v23  ;;  %v180_v31 = vmul.f32 2.0, %v34_v11  ;;  %v52_v32 = vrot.slane %v33_v6, 1  ;;  %v179_v33 = vmul.f32 2.0, %v33_v6 }
  0x29   :  { %263 = vrot.lane.b32.xlu1 %v604_v20, %s534_s0  ;;  %v613_v35 = vmul.f32 0.25, %v210_v26  ;;  %v209_v36 = vadd.f32 %v193_v27, %v130_v22  ;;  %v166_v37 = vsel %vm120_vm1, %v131_v28, %v88_v23  ;;  %v90_v38 = vrot.slane %v35_v24, 7 }
  0x2a   :  { %261 = vrot.lane.b32.xlu0 %v608_v25, %s534_s0  ;;  %v196_v40 = vadd.f32 %v180_v31, %v89_v30  ;;  %v117_v41 = vsel %vm71_vm0, %v52_v32, %v87_v19  ;;  %v132_v42 = vsel %vm120_vm1, %v52_v32, %v131_v28  ;;  %v91_v43 = vrot.slane %v36_v29, 7 }
  0x2b   :  { %v620_v46 = vmul.f32 0.25, %v209_v36  ;;  %v195_v47 = vadd.f32 %v179_v33, %v117_v41  ;;  %v133_v48 = vrot.slane %v36_v29, 1  ;;  %v182_v50 = vmul.f32 2.0, %v36_v29 }
  0x2c   :  { %v212_v52 = vadd.f32 %v196_v40, %v166_v37  ;;  %v92_v53 = vsel %vm71_vm0, %v90_v38, %v91_v43  ;;  %v53_v54 = vrot.slane %v35_v24, 1  ;;  %v181_v55 = vmul.f32 2.0, %v35_v24 }
  0x2d   :  { %267 = vrot.lane.b32.xlu1 %v613_v35, %s534_s0  ;;  %v211_v56 = vadd.f32 %v195_v47, %v132_v42  ;;  %v167_v57 = vsel %vm120_vm1, %v133_v48, %v91_v43  ;;  %v198_v58 = vadd.f32 %v182_v50, %v92_v53  ;;  %v93_v59 = vrot.slane %v37_v45, 7 }
  0x2e   :  { %265 = vrot.lane.b32.xlu0 %v620_v46, %s534_s0  ;;  %v628_v60 = vmul.f32 0.25, %v212_v52  ;;  %v118_v61 = vsel %vm71_vm0, %v53_v54, %v90_v38  ;;  %v134_v63 = vsel %vm120_vm1, %v53_v54, %v133_v48  ;;  %v94_v0 = vrot.slane %v38_v51, 7 }
  0x2f   :  { %v632_v1 = vmul.f32 0.25, %v211_v56  ;;  %v214_v2 = vadd.f32 %v198_v58, %v167_v57  ;;  %v197_v3 = vadd.f32 %v181_v55, %v118_v61  ;;  %v135_v4 = vrot.slane %v38_v51, 1 }
  0x30   :  { %v95_v5 = vsel %vm71_vm0, %v93_v59, %v94_v0  ;;  %v184_v6 = vmul.f32 2.0, %v38_v51  ;;  %v54_v8 = vrot.slane %v37_v45, 1  ;;  %v183_v9 = vmul.f32 2.0, %v37_v45 }
  0x31   :  { %271 = vrot.lane.b32.xlu1 %v628_v60, %s534_s0  ;;  %v637_v10 = vmul.f32 0.25, %v214_v2  ;;  %v213_v11 = vadd.f32 %v197_v3, %v134_v63  ;;  %v168_v12 = vsel %vm120_vm1, %v135_v4, %v94_v0  ;;  %vm345_vm2 = vcmask 7168  }
  0x32   :  { %269 = vrot.lane.b32.xlu0 %v632_v1, %s534_s0  ;;  %v200_v13 = vadd.f32 %v184_v6, %v95_v5  ;;  %v119_v14 = vsel %vm71_vm0, %v54_v8, %v93_v59  ;;  %v136_v15 = vsel %vm120_vm1, %v54_v8, %v135_v4  ;;  %v380_v43 = vmul.f32 2.0, %v582_v49 }
  0x33   :  { %v644_v16 = vmul.f32 0.25, %v213_v11  ;;  %v199_v17 = vadd.f32 %v183_v9, %v119_v14  ;;  %v379_v45 = vmul.f32 2.0, %v572_v39  ;;  %vm362_vm3 = vcmask 121856  }
  0x34   :  { %v216_v18 = vadd.f32 %v200_v13, %v168_v12  ;;  %v382_v53 = vmul.f32 2.0, %v577_v44  ;;  %v381_v56 = vmul.f32 2.0, %v570_v34  ;;  %vm443_vm4 = vcmask 130048  }
  0x35   :  { %275 = vrot.lane.b32.xlu1 %v637_v10, %s534_s0  ;;  %v215_v19 = vadd.f32 %v199_v17, %v136_v15  ;;  %v386_v17 = vmul.f32 2.0, %v604_v20 }
  0x36   :  { %273 = vrot.lane.b32.xlu0 %v644_v16, %s534_s0  ;;  %v650_v21 = vmul.f32 0.25, %v216_v18 }
  0x37   :  { %v652_v22 = vmul.f32 0.25, %v215_v19 }
  0x39   :  { %279 = vrot.lane.b32.xlu1 %v650_v21, %s534_s0 }
  0x3a   :  { %277 = vrot.lane.b32.xlu0 %v652_v22, %s534_s0 }
  0x3d   :  { %299 = vrot.lane.b32.xlu1 %v582_v49, %s535_s20 }
  0x3e   :  { %297 = vrot.lane.b32.xlu0 %v572_v39, %s535_s20 }
  0x41   :  { %303 = vrot.lane.b32.xlu1 %v577_v44, %s535_s20  ;;  %v384_v44 = vmul.f32 2.0, %v588_v62 }
  0x42   :  { %301 = vrot.lane.b32.xlu0 %v570_v34, %s535_s20  ;;  %v383_v34 = vmul.f32 2.0, %v596_v7 }
  0x45   :  { %307 = vrot.lane.b32.xlu1 %v588_v62, %s535_s20 }
  0x46   :  { %305 = vrot.lane.b32.xlu0 %v596_v7, %s535_s20 }
  0x49   :  { %311 = vrot.lane.b32.xlu1 %v604_v20, %s535_s20 }
  0x4a   :  { %309 = vrot.lane.b32.xlu0 %v608_v25, %s535_s20 }
  0x4d   :  { %315 = vrot.lane.b32.xlu1 %v613_v35, %s535_s20 }
  0x4e   :  { %313 = vrot.lane.b32.xlu0 %v620_v46, %s535_s20 }
  0x51   :  { %319 = vrot.lane.b32.xlu1 %v628_v60, %s535_s20 }
  0x52   :  { %317 = vrot.lane.b32.xlu0 %v632_v1, %s535_s20 }
  0x55   :  { %323 = vrot.lane.b32.xlu1 %v637_v10, %s535_s20 }
  0x56   :  { %321 = vrot.lane.b32.xlu0 %v644_v16, %s535_s20 }
  0x59   :  { %327 = vrot.lane.b32.xlu1 %v650_v21, %s535_s20 }
  0x5a   :  { %325 = vrot.lane.b32.xlu0 %v652_v22, %s535_s20 }
  0x8f   :  { %v254_v23 = vpop.permute.xlu1 %253 }
  0x90   :  { %v250_v24 = vpop.permute.xlu0 %249 }
  0x93   :  { %v256_v26 = vpop.permute.xlu1 %255 }
  0x94   :  { %v252_v27 = vpop.permute.xlu0 %251 }
  0x97   :  { %v260_v28 = vpop.permute.xlu1 %259 }
  0x98   :  { %v258_v29 = vpop.permute.xlu0 %257 }
  0x9b   :  { %v674_v30 = vpop.permute.xlu1 %263 }
  0x9c   :  { %v676_v31 = vpop.permute.xlu0 %261 }
  0x9f   :  { %v678_v32 = vpop.permute.xlu1 %267 }
  0xa0   :  { %v680_v33 = vpop.permute.xlu0 %265 }
  0xa3   :  { %v682_v36 = vpop.permute.xlu1 %271 }
  0xa4   :  { %v684_v37 = vpop.permute.xlu0 %269 }
  0xa7   :  { %v686_v38 = vpop.permute.xlu1 %275 }
  0xa8   :  { %v688_v40 = vpop.permute.xlu0 %273 }
  0xab   :  { %v690_v41 = vpop.permute.xlu1 %279 }
  0xac   :  { %v692_v42 = vpop.permute.xlu0 %277 }
  0xaf   :  { %v300_v47 = vpop.permute.xlu1 %299 }
  0xb0   :  { %v347_v48 = vsel %vm345_vm2, %v252_v27, %v300_v47  ;;  %v298_v50 = vpop.permute.xlu0 %297  ;;  %v364_v54 = vsel %vm362_vm3, %v252_v27, %v300_v47 }
  0xb1   :  { %v396_v51 = vadd.f32 %v380_v43, %v347_v48  ;;  %v346_v52 = vsel %vm345_vm2, %v250_v24, %v298_v50  ;;  %v363_v49 = vsel %vm362_vm3, %v250_v24, %v298_v50  ;;  %v385_v24 = vmul.f32 2.0, %v608_v25 }
  0xb2   :  { %v395_v55 = vadd.f32 %v379_v45, %v346_v52  ;;  %v388_v25 = vmul.f32 2.0, %v613_v35  ;;  %v387_v52 = vmul.f32 2.0, %v620_v46  ;;  %v390_v46 = vmul.f32 2.0, %v628_v60 }
  0xb3   :  { %v412_v57 = vadd.f32 %v396_v51, %v364_v54  ;;  %v304_v58 = vpop.permute.xlu1 %303 }
  0xb4   :  { %v411_v39 = vadd.f32 %v395_v55, %v363_v49  ;;  %v349_v59 = vsel %vm345_vm2, %v256_v26, %v304_v58  ;;  %v302_v61 = vpop.permute.xlu0 %301  ;;  %v366_v4 = vsel %vm362_vm3, %v256_v26, %v304_v58 }
  0xb5   :  { %v428_v63 = vmul.f32 0.25, %v412_v57  ;;  %v398_v0 = vadd.f32 %v382_v53, %v349_v59  ;;  %v348_v2 = vsel %vm345_vm2, %v254_v23, %v302_v61  ;;  %v365_v8 = vsel %vm362_vm3, %v254_v23, %v302_v61 }
  0xb6   :  { %v427_v3 = vmul.f32 0.25, %v411_v39  ;;  %v397_v5 = vadd.f32 %v381_v56, %v348_v2  ;;  %v389_v61 = vmul.f32 2.0, %v632_v1  ;;  %v392_v1 = vmul.f32 2.0, %v637_v10 }
  0xb7   :  { %445 = vst.msk [vmem:[#allocation5 + $0x8] sm:$0xff] %vm443_vm4, %v428_v63  ;;  %v414_v6 = vadd.f32 %v398_v0, %v366_v4  ;;  %v308_v9 = vpop.permute.xlu1 %307 }
  0xb8   :  { %444 = vst.msk [vmem:[#allocation5] sm:$0xff] %vm443_vm4, %v427_v3  ;;  %v413_v11 = vadd.f32 %v397_v5, %v365_v8  ;;  %v351_v12 = vsel %vm345_vm2, %v260_v28, %v308_v9  ;;  %v306_v13 = vpop.permute.xlu0 %305  ;;  %v368_v7 = vsel %vm362_vm3, %v260_v28, %v308_v9  ;;  %v391_v8 = vmul.f32 2.0, %v644_v16 }
  0xb9   :  { %v430_v14 = vmul.f32 0.25, %v414_v6  ;;  %v400_v62 = vadd.f32 %v384_v44, %v351_v12  ;;  %v350_v15 = vsel %vm345_vm2, %v258_v29, %v306_v13  ;;  %v367_v26 = vsel %vm362_vm3, %v258_v29, %v306_v13 }
  0xba   :  { %v429_v18 = vmul.f32 0.25, %v413_v11  ;;  %v399_v19 = vadd.f32 %v383_v34, %v350_v15  ;;  %v394_v16 = vmul.f32 2.0, %v650_v21 }
  0xbb   :  { %447 = vst.msk [vmem:[#allocation5 + $0x18] sm:$0xff] %vm443_vm4, %v430_v14  ;;  %v416_v23 = vadd.f32 %v400_v62, %v368_v7  ;;  %v312_v27 = vpop.permute.xlu1 %311  ;;  %v393_v7 = vmul.f32 2.0, %v652_v22 }
  0xbc   :  { %446 = vst.msk [vmem:[#allocation5 + $0x10] sm:$0xff] %vm443_vm4, %v429_v18  ;;  %v415_v43 = vadd.f32 %v399_v19, %v367_v26  ;;  %v353_v45 = vsel %vm345_vm2, %v674_v30, %v312_v27  ;;  %v310_v47 = vpop.permute.xlu0 %309  ;;  %v370_v51 = vsel %vm362_vm3, %v674_v30, %v312_v27 }
  0xbd   :  { %v432_v20 = vmul.f32 0.25, %v416_v23  ;;  %v402_v48 = vadd.f32 %v386_v17, %v353_v45  ;;  %v352_v28 = vsel %vm345_vm2, %v676_v31, %v310_v47  ;;  %v369_v54 = vsel %vm362_vm3, %v676_v31, %v310_v47 }
  0xbe   :  { %v431_v50 = vmul.f32 0.25, %v415_v43  ;;  %v401_v29 = vadd.f32 %v385_v24, %v352_v28 }
  0xbf   :  { %449 = vst.msk [vmem:[#allocation5 + $0x28] sm:$0xff] %vm443_vm4, %v432_v20  ;;  %v418_v53 = vadd.f32 %v402_v48, %v370_v51  ;;  %v316_v55 = vpop.permute.xlu1 %315 }
  0xc0   :  { %448 = vst.msk [vmem:[#allocation5 + $0x20] sm:$0xff] %vm443_vm4, %v431_v50  ;;  %v417_v56 = vadd.f32 %v401_v29, %v369_v54  ;;  %v355_v35 = vsel %vm345_vm2, %v678_v32, %v316_v55  ;;  %v314_v57 = vpop.permute.xlu0 %313  ;;  %v372_v59 = vsel %vm362_vm3, %v678_v32, %v316_v55 }
  0xc1   :  { %v434_v49 = vmul.f32 0.25, %v418_v53  ;;  %v404_v58 = vadd.f32 %v388_v25, %v355_v35  ;;  %v354_v30 = vsel %vm345_vm2, %v680_v33, %v314_v57  ;;  %v371_v0 = vsel %vm362_vm3, %v680_v33, %v314_v57 }
  0xc2   :  { %v433_v39 = vmul.f32 0.25, %v417_v56  ;;  %v403_v31 = vadd.f32 %v387_v52, %v354_v30 }
  0xc3   :  { %451 = vst.msk [vmem:[#allocation5 + $0x38] sm:$0xff] %vm443_vm4, %v434_v49  ;;  %v420_v63 = vadd.f32 %v404_v58, %v372_v59  ;;  %v320_v2 = vpop.permute.xlu1 %319 }
  0xc4   :  { %450 = vst.msk [vmem:[#allocation5 + $0x30] sm:$0xff] %vm443_vm4, %v433_v39  ;;  %v419_v44 = vadd.f32 %v403_v31, %v371_v0  ;;  %v357_v60 = vsel %vm345_vm2, %v682_v36, %v320_v2  ;;  %v318_v3 = vpop.permute.xlu0 %317  ;;  %v374_v6 = vsel %vm362_vm3, %v682_v36, %v320_v2 }
  0xc5   :  { %v436_v4 = vmul.f32 0.25, %v420_v63  ;;  %v406_v5 = vadd.f32 %v390_v46, %v357_v60  ;;  %v356_v32 = vsel %vm345_vm2, %v684_v37, %v318_v3  ;;  %v373_v11 = vsel %vm362_vm3, %v684_v37, %v318_v3 }
  0xc6   :  { %v435_v34 = vmul.f32 0.25, %v419_v44  ;;  %v405_v33 = vadd.f32 %v389_v61, %v356_v32 }
  0xc7   :  { %453 = vst.msk [vmem:[#allocation5 + $0x48] sm:$0xff] %vm443_vm4, %v436_v4  ;;  %v422_v9 = vadd.f32 %v406_v5, %v374_v6  ;;  %v324_v12 = vpop.permute.xlu1 %323 }
  0xc8   :  { %452 = vst.msk [vmem:[#allocation5 + $0x40] sm:$0xff] %vm443_vm4, %v435_v34  ;;  %v421_v13 = vadd.f32 %v405_v33, %v373_v11  ;;  %v359_v10 = vsel %vm345_vm2, %v686_v38, %v324_v12  ;;  %v322_v14 = vpop.permute.xlu0 %321  ;;  %v376_v18 = vsel %vm362_vm3, %v686_v38, %v324_v12 }
  0xc9   :  { %v438_v62 = vmul.f32 0.25, %v422_v9  ;;  %v408_v15 = vadd.f32 %v392_v1, %v359_v10  ;;  %v358_v36 = vsel %vm345_vm2, %v688_v40, %v322_v14  ;;  %v375_v24 = vsel %vm362_vm3, %v688_v40, %v322_v14 }
  0xca   :  { %v437_v17 = vmul.f32 0.25, %v421_v13  ;;  %v407_v37 = vadd.f32 %v391_v8, %v358_v36 }
  0xcb   :  { %455 = vst.msk [vmem:[#allocation5 + $0x58] sm:$0xff] %vm443_vm4, %v438_v62  ;;  %v424_v19 = vadd.f32 %v408_v15, %v376_v18  ;;  %v328_v23 = vpop.permute.xlu1 %327 }
  0xcc   :  { %454 = vst.msk [vmem:[#allocation5 + $0x50] sm:$0xff] %vm443_vm4, %v437_v17  ;;  %v423_v26 = vadd.f32 %v407_v37, %v375_v24  ;;  %v361_v21 = vsel %vm345_vm2, %v690_v41, %v328_v23  ;;  %v326_v27 = vpop.permute.xlu0 %325  ;;  %v378_v47 = vsel %vm362_vm3, %v690_v41, %v328_v23 }
  0xcd   :  { %v440_v43 = vmul.f32 0.25, %v424_v19  ;;  %v410_v45 = vadd.f32 %v394_v16, %v361_v21  ;;  %v360_v38 = vsel %vm345_vm2, %v692_v42, %v326_v27  ;;  %v377_v48 = vsel %vm362_vm3, %v692_v42, %v326_v27 }
  0xce   :  { %v439_v22 = vmul.f32 0.25, %v423_v26  ;;  %v409_v20 = vadd.f32 %v393_v7, %v360_v38 }
  0xcf   :  { %457 = vst.msk [vmem:[#allocation5 + $0x68] sm:$0xff] %vm443_vm4, %v440_v43  ;;  %v426_v40 = vadd.f32 %v410_v45, %v378_v47 }
  0xd0   :  { %456 = vst.msk [vmem:[#allocation5 + $0x60] sm:$0xff] %vm443_vm4, %v439_v22  ;;  %v425_v28 = vadd.f32 %v409_v20, %v377_v48 }
  0xd1   :  { %v442_v25 = vmul.f32 0.25, %v426_v40 }
  0xd2   :  { %v441_v50 = vmul.f32 0.25, %v425_v28 }
  0xd3   :  { %459 = vst.msk [vmem:[#allocation5 + $0x78] sm:$0xff] %vm443_vm4, %v442_v25 }
  0xd4   :  { %458 = vst.msk [vmem:[#allocation5 + $0x70] sm:$0xff] %vm443_vm4, %v441_v50 }
  0xd5   :  { %516 = shalt.err (!%p513_p12)
}
  0xd6   :  { %s517_s26 = scalar_lea.hbm %s794_s1, 2048 }
  0xd7   :  { %p518_p13 = scmp.ne.s32.totalorder %s794_s1, %s517_s26  ;;  %p521_p0 = scmp.lt.u32.totalorder %s517_s26, %s794_s1 }
  0xd9   :  { %p523_p1 = pnand %p521_p0, %p518_p13 }
  0xdb   :  { %526 = shalt.err (!%p523_p1)
}
  0xdc   :  { %471 = dma.vmem_to_hbm [thread:$0]  %s466_s22, 2048, %s794_s1, [#allocation4], %s532_s16, %s532_s16, %s533_s17  }
  0xdd   :  { %529 = dma.done.wait [#allocation4], 2048  }
  0xde   :  { %530 = vsyncadd [#allocation4], 4294965248 }
  0xdf   :  { %475 = vsyncpa [#allocation3], 1 }
  0xe0   :  { %476 = vsyncpa [#allocation4], 1 }

</bundles_post_ra>
